<compile_context>
chip_gen: v7x
topology: tpu7x:2x2x1
jax: 0.10.0
libtpu: 0.0.40
codegen_flags: <defaults>
</compile_context>

<pallas_src>
import jax
import jax.numpy as jnp
from jax.experimental import pallas as pl
from jax.experimental.pallas import tpu as pltpu


def _round_up(a: int, m: int) -> int:
    return ((a + m - 1) // m) * m


def global_model_forward(x, edge_index, edge_attr, u, batch, W, b, *, tile_rows=1024):
    """Pallas implementation of GlobalModel.forward (reduce='sum', activation=True).

    x:          [N, Fx] f32      edge_index: [2, E] int32    edge_attr: [E, Fe] f32
    u:          [B, Fu] f32      batch:      [N]    int32 (graph id per node, in [0, B))
    W:          [Fx+Fe+Fu, out_dim] f32 (Linear weight, already transposed)
    b:          [out_dim] f32
    """
    f32 = jnp.float32
    N, Fx = x.shape
    E, Fe = edge_attr.shape
    B, Fu = u.shape
    in_dim, out_dim = W.shape
    assert in_dim == Fx + Fe + Fu

    # ---- glue (gather + padding + layout) stays in plain JAX -----------------
    batch = batch.astype(jnp.int32)
    if E > 0:
        batch_edge = batch[edge_index[1].astype(jnp.int32)]
    else:  # guard zero-edge graphs: padding rows below are zero-features anyway
        batch_edge = jnp.zeros((0,), jnp.int32)

    # Row tiles (reduction axis); clamp to the (8-rounded) problem size.
    TN = min(tile_rows, max(_round_up(N, 8), 8))
    TE = min(tile_rows, max(_round_up(E, 8), 8))
    N_pad = max(_round_up(N, TN), TN)
    E_pad = max(_round_up(E, TE), TE)
    nt_n = N_pad // TN
    nt_e = E_pad // TE
    num_tiles = max(nt_n, nt_e)

    B_pad = _round_up(B, 8)          # sublane-pad the tiny batch dimension
    out_pad = _round_up(out_dim, 128)  # lane-dense output store

    # Zero-pad rows: zero features contribute nothing regardless of segment id.
    x_p = jnp.zeros((N_pad, Fx), f32).at[:N].set(x.astype(f32))
    e_p = jnp.zeros((E_pad, Fe), f32).at[:E].set(edge_attr.astype(f32))
    u_p = jnp.zeros((B_pad, Fu), f32).at[:B].set(u.astype(f32))
    bn_p = jnp.zeros((1, N_pad), jnp.int32).at[0, :N].set(batch)
    be_p = jnp.zeros((1, E_pad), jnp.int32).at[0, :E].set(batch_edge)
    W_p = jnp.zeros((in_dim, out_pad), f32).at[:, :out_dim].set(W.astype(f32))
    b_p = jnp.zeros((1, out_pad), f32).at[0, :out_dim].set(b.astype(f32))

    # ---- kernel body (closure over static tiling constants) ------------------
    def kernel(bn_ref, be_ref, x_ref, e_ref, u_ref, w_ref, bias_ref,
               out_ref, x_acc, e_acc):
        k = pl.program_id(0)

        @pl.when(k == 0)
        def _init():
            x_acc[...] = jnp.zeros_like(x_acc)
            e_acc[...] = jnp.zeros_like(e_acc)

        def node_tile():
            seg = bn_ref[...]                                     # [1, TN] int32
            onehot = (jax.lax.broadcasted_iota(jnp.int32, (B_pad, TN), 0)
                      == seg).astype(x_ref.dtype)                 # per-tile one-hot
            x_acc[...] += jnp.dot(onehot, x_ref[...],
                                  preferred_element_type=jnp.float32)

        def edge_tile():
            seg = be_ref[...]                                     # [1, TE] int32
            onehot = (jax.lax.broadcasted_iota(jnp.int32, (B_pad, TE), 0)
                      == seg).astype(e_ref.dtype)
            e_acc[...] += jnp.dot(onehot, e_ref[...],
                                  preferred_element_type=jnp.float32)

        # Guard only when the two streams have unequal tile counts.
        if nt_n == num_tiles:
            node_tile()
        else:
            pl.when(k < nt_n)(node_tile)
        if nt_e == num_tiles:
            edge_tile()
        else:
            pl.when(k < nt_e)(edge_tile)

        @pl.when(k == num_tiles - 1)
        def _finalize():
            # Single concatenated matmul: cat([xg, eg, u]) @ W  (+ bias, ReLU).
            h = jnp.concatenate(
                [x_acc[...], e_acc[...], u_ref[...].astype(jnp.float32)],
                axis=-1)                                          # [B_pad, in_dim]
            z = jnp.dot(h, w_ref[...],
                        preferred_element_type=jnp.float32) + bias_ref[...]
            out_ref[...] = jnp.maximum(z, 0.0).astype(out_ref.dtype)

    # ---- specs ----------------------------------------------------------------
    in_specs = [
        pl.BlockSpec((1, TN), lambda k: (0, jnp.minimum(k, nt_n - 1))),      # node seg ids
        pl.BlockSpec((1, TE), lambda k: (0, jnp.minimum(k, nt_e - 1))),      # edge seg ids
        pl.BlockSpec((TN, Fx), lambda k: (jnp.minimum(k, nt_n - 1), 0)),     # x tile
        pl.BlockSpec((TE, Fe), lambda k: (jnp.minimum(k, nt_e - 1), 0)),     # edge_attr tile
        pl.BlockSpec((B_pad, Fu), lambda k: (0, 0)),                         # u (resident)
        pl.BlockSpec((in_dim, out_pad), lambda k: (0, 0)),                   # W (resident)
        pl.BlockSpec((1, out_pad), lambda k: (0, 0)),                        # bias (resident)
    ]
    out_specs = pl.BlockSpec((B_pad, out_pad), lambda k: (0, 0))
    scratch_shapes = [pltpu.VMEM((B_pad, Fx), f32),
                      pltpu.VMEM((B_pad, Fe), f32)]

    flops = (2 * B_pad * (N_pad * Fx + E_pad * Fe)
             + 2 * B_pad * in_dim * out_pad)
    bytes_accessed = 4 * (N_pad * Fx + E_pad * Fe + N_pad + E_pad
                          + B_pad * Fu + in_dim * out_pad + out_pad
                          + B_pad * out_pad)

    out = pl.pallas_call(
        kernel,
        out_shape=jax.ShapeDtypeStruct((B_pad, out_pad), f32),
        grid_spec=pltpu.PrefetchScalarGridSpec(
            num_scalar_prefetch=0,
            grid=(num_tiles,),
            in_specs=in_specs,
            out_specs=out_specs,
            scratch_shapes=scratch_shapes),
        compiler_params=pltpu.CompilerParams(
            dimension_semantics=("arbitrary",),       # reduction axis with carried acc
            vmem_limit_bytes=32 * 1024 * 1024),       # safe on v5e/v6e/v7x scoped VMEM
        cost_estimate=pl.CostEstimate(
            flops=int(flops), transcendentals=0,
            bytes_accessed=int(bytes_accessed)),
    )(bn_p, be_p, x_p, e_p, u_p, W_p, b_p)

    return out[:B, :out_dim]


def _reference(x, edge_index, edge_attr, u, batch, W, b):
    """Pure-JAX reference for a sanity check."""
    B = u.shape[0]
    x_global = jax.ops.segment_sum(x, batch, num_segments=B)
    batch_edge = batch[edge_index[1]]
    e_global = jax.ops.segment_sum(edge_attr, batch_edge, num_segments=B)
    z = jnp.concatenate([x_global, e_global, u], axis=-1) @ W + b
    return jnp.maximum(z, 0.0)


if __name__ == "__main__":
    key = jax.random.PRNGKey(0)

    def run_case(case_key, B, N, E, Fx, Fe, Fu, out_dim, tile_rows):
        k = jax.random.split(case_key, 7)
        x = jax.random.normal(k[0], (N, Fx), jnp.float32)
        edge_attr = jax.random.normal(k[1], (E, Fe), jnp.float32)
        u = jax.random.normal(k[2], (B, Fu), jnp.float32)
        batch = jnp.sort(jax.random.randint(k[3], (N,), 0, B)).astype(jnp.int32)
        edge_index = jax.random.randint(k[4], (2, E), 0, N).astype(jnp.int32)
        in_dim = Fx + Fe + Fu
        bound = in_dim ** -0.5  # PyTorch Linear default init range
        W = jax.random.uniform(k[5], (in_dim, out_dim), jnp.float32, -bound, bound)
        b = jax.random.uniform(k[6], (out_dim,), jnp.float32, -bound, bound)

        out = global_model_forward(x, edge_index, edge_attr, u, batch, W, b,
                                   tile_rows=tile_rows)
        out = jax.block_until_ready(out)
        ref = _reference(x, edge_index, edge_attr, u, batch, W, b)
        assert out.shape == ref.shape
        err = float(jnp.max(jnp.abs(out - ref)))
        assert jnp.allclose(out, ref, atol=1e-4, rtol=1e-4), f"max abs err {err}"

    k1, k2 = jax.random.split(key)
    # Small case (B=2 graphs) matching the module spec.
    run_case(k1, B=2, N=16, E=24, Fx=8, Fe=6, Fu=4, out_dim=32, tile_rows=1024)
    # Multi-tile case exercising the streaming reduction grid (nt_n != nt_e).
    run_case(k2, B=5, N=1500, E=2304, Fx=16, Fe=12, Fu=8, out_dim=64, tile_rows=512)

    print("KERNEL_OK")
</pallas_src>

<mosaic_0001>
module attributes {stable_mosaic.version = 11 : i64} {
  func.func @kernel(%arg0: i32, %arg1: memref<1x16xi32, #tpu.memory_space<vmem>>, %arg2: memref<1x24xi32, #tpu.memory_space<vmem>>, %arg3: memref<16x8xf32, #tpu.memory_space<vmem>>, %arg4: memref<24x6xf32, #tpu.memory_space<vmem>>, %arg5: memref<8x4xf32, #tpu.memory_space<vmem>>, %arg6: memref<18x128xf32, #tpu.memory_space<vmem>>, %arg7: memref<1x128xf32, #tpu.memory_space<vmem>>, %arg8: memref<8x128xf32, #tpu.memory_space<vmem>>, %arg9: memref<8x8xf32, #tpu.memory_space<vmem>>, %arg10: memref<8x6xf32, #tpu.memory_space<vmem>>) attributes {dimension_semantics = [#tpu.dimension_semantics<arbitrary>], iteration_bounds = array<i64: 1>, scalar_prefetch = 0 : i64, scratch_operands = 2 : i64, tpu.core_type = #tpu.core_type<tc>, window_params = [{transform_indices = @transform_0, window_bounds = array<i64: 1, 16>}, {transform_indices = @transform_1, window_bounds = array<i64: 1, 24>}, {transform_indices = @transform_2, window_bounds = array<i64: 16, 8>}, {transform_indices = @transform_3, window_bounds = array<i64: 24, 6>}, {pipeline_mode = #tpu.pipeline_mode<synchronous>, transform_indices = @transform_4, window_bounds = array<i64: 8, 4>}, {pipeline_mode = #tpu.pipeline_mode<synchronous>, transform_indices = @transform_5, window_bounds = array<i64: 18, 128>}, {pipeline_mode = #tpu.pipeline_mode<synchronous>, transform_indices = @transform_6, window_bounds = array<i64: 1, 128>}, {pipeline_mode = #tpu.pipeline_mode<synchronous>, transform_indices = @transform_7, window_bounds = array<i64: 8, 128>}]} {
    %c0_i32 = arith.constant 0 : i32
    %0 = arith.cmpi eq, %arg0, %c0_i32 : i32
    %1 = arith.extui %0 : i1 to i32
    %c0_i32_0 = arith.constant 0 : i32
    %2 = arith.cmpi ne, %1, %c0_i32_0 : i32
    scf.if %2 {
      %cst_19 = arith.constant 0.000000e+00 : f32
      %28 = vector.broadcast %cst_19 : f32 to vector<8x8xf32>
      %c0_20 = arith.constant 0 : index
      %c0_21 = arith.constant 0 : index
      %29 = vector.load %arg9[%c0_20, %c0_21] : memref<8x8xf32, #tpu.memory_space<vmem>>, vector<8x8xf32>
      tpu.vector_store %arg9[%c0_20, %c0_21], %28 {strides = array<i32>} : memref<8x8xf32, #tpu.memory_space<vmem>>, vector<8x8xf32>,
      %cst_22 = arith.constant 0.000000e+00 : f32
      %30 = vector.broadcast %cst_22 : f32 to vector<8x6xf32>
      %c0_23 = arith.constant 0 : index
      %c0_24 = arith.constant 0 : index
      %31 = vector.load %arg10[%c0_23, %c0_24] : memref<8x6xf32, #tpu.memory_space<vmem>>, vector<8x6xf32>
      tpu.vector_store %arg10[%c0_23, %c0_24], %30 {strides = array<i32>} : memref<8x6xf32, #tpu.memory_space<vmem>>, vector<8x6xf32>,
    } else {
    }
    %c0 = arith.constant 0 : index
    %c0_1 = arith.constant 0 : index
    %3 = vector.load %arg1[%c0, %c0_1] : memref<1x16xi32, #tpu.memory_space<vmem>>, vector<1x16xi32>
    %4 = tpu.iota {dimensions = array<i32: 0>} : vector<8x16xi32>
    %5 = vector.broadcast %3 : vector<1x16xi32> to vector<8x16xi32>
    %6 = arith.cmpi eq, %4, %5 : vector<8x16xi32>
    %7 = arith.extui %6 : vector<8x16xi1> to vector<8x16xi32>
    %8 = arith.sitofp %7 : vector<8x16xi32> to vector<8x16xf32>
    %c0_2 = arith.constant 0 : index
    %c0_3 = arith.constant 0 : index
    %9 = vector.load %arg9[%c0_2, %c0_3] : memref<8x8xf32, #tpu.memory_space<vmem>>, vector<8x8xf32>
    %c0_4 = arith.constant 0 : index
    %c0_5 = arith.constant 0 : index
    %10 = vector.load %arg3[%c0_4, %c0_5] : memref<16x8xf32, #tpu.memory_space<vmem>>, vector<16x8xf32>
    %cst = arith.constant dense<0.000000e+00> : vector<8x8xf32>
    %11 = tpu.matmul %8, %10, %cst {dimension_numbers = #tpu.dot_dimension_numbers<[1], [0], [0], [1], [0, 0, 1, 1], [], []>} : vector<8x16xf32>, vector<16x8xf32>, vector<8x8xf32> -> vector<8x8xf32>
    %12 = arith.addf %9, %11 : vector<8x8xf32>
    %c0_6 = arith.constant 0 : index
    %c0_7 = arith.constant 0 : index
    %13 = vector.load %arg9[%c0_6, %c0_7] : memref<8x8xf32, #tpu.memory_space<vmem>>, vector<8x8xf32>
    tpu.vector_store %arg9[%c0_6, %c0_7], %12 {strides = array<i32>} : memref<8x8xf32, #tpu.memory_space<vmem>>, vector<8x8xf32>,
    %c0_8 = arith.constant 0 : index
    %c0_9 = arith.constant 0 : index
    %14 = vector.load %arg2[%c0_8, %c0_9] : memref<1x24xi32, #tpu.memory_space<vmem>>, vector<1x24xi32>
    %15 = tpu.iota {dimensions = array<i32: 0>} : vector<8x24xi32>
    %16 = vector.broadcast %14 : vector<1x24xi32> to vector<8x24xi32>
    %17 = arith.cmpi eq, %15, %16 : vector<8x24xi32>
    %18 = arith.extui %17 : vector<8x24xi1> to vector<8x24xi32>
    %19 = arith.sitofp %18 : vector<8x24xi32> to vector<8x24xf32>
    %c0_10 = arith.constant 0 : index
    %c0_11 = arith.constant 0 : index
    %20 = vector.load %arg10[%c0_10, %c0_11] : memref<8x6xf32, #tpu.memory_space<vmem>>, vector<8x6xf32>
    %c0_12 = arith.constant 0 : index
    %c0_13 = arith.constant 0 : index
    %21 = vector.load %arg4[%c0_12, %c0_13] : memref<24x6xf32, #tpu.memory_space<vmem>>, vector<24x6xf32>
    %cst_14 = arith.constant dense<0.000000e+00> : vector<8x6xf32>
    %22 = tpu.matmul %19, %21, %cst_14 {dimension_numbers = #tpu.dot_dimension_numbers<[1], [0], [0], [1], [0, 0, 1, 1], [], []>} : vector<8x24xf32>, vector<24x6xf32>, vector<8x6xf32> -> vector<8x6xf32>
    %23 = arith.addf %20, %22 : vector<8x6xf32>
    %c0_15 = arith.constant 0 : index
    %c0_16 = arith.constant 0 : index
    %24 = vector.load %arg10[%c0_15, %c0_16] : memref<8x6xf32, #tpu.memory_space<vmem>>, vector<8x6xf32>
    tpu.vector_store %arg10[%c0_15, %c0_16], %23 {strides = array<i32>} : memref<8x6xf32, #tpu.memory_space<vmem>>, vector<8x6xf32>,
    %c0_i32_17 = arith.constant 0 : i32
    %25 = arith.cmpi eq, %arg0, %c0_i32_17 : i32
    %26 = arith.extui %25 : i1 to i32
    %c0_i32_18 = arith.constant 0 : i32
    %27 = arith.cmpi ne, %26, %c0_i32_18 : i32
    scf.if %27 {
      %c0_19 = arith.constant 0 : index
      %c0_20 = arith.constant 0 : index
      %28 = vector.load %arg9[%c0_19, %c0_20] : memref<8x8xf32, #tpu.memory_space<vmem>>, vector<8x8xf32>
      %c0_21 = arith.constant 0 : index
      %c0_22 = arith.constant 0 : index
      %29 = vector.load %arg10[%c0_21, %c0_22] : memref<8x6xf32, #tpu.memory_space<vmem>>, vector<8x6xf32>
      %c0_23 = arith.constant 0 : index
      %c0_24 = arith.constant 0 : index
      %30 = vector.load %arg5[%c0_23, %c0_24] : memref<8x4xf32, #tpu.memory_space<vmem>>, vector<8x4xf32>
      %31 = tpu.concatenate %28, %29, %30 in 1 : vector<8x8xf32>, vector<8x6xf32>, vector<8x4xf32> -> vector<8x18xf32>
      %c0_25 = arith.constant 0 : index
      %c0_26 = arith.constant 0 : index
      %32 = vector.load %arg6[%c0_25, %c0_26] : memref<18x128xf32, #tpu.memory_space<vmem>>, vector<18x128xf32>
      %cst_27 = arith.constant dense<0.000000e+00> : vector<8x128xf32>
      %33 = tpu.matmul %31, %32, %cst_27 {dimension_numbers = #tpu.dot_dimension_numbers<[1], [0], [0], [1], [0, 0, 1, 1], [], []>} : vector<8x18xf32>, vector<18x128xf32>, vector<8x128xf32> -> vector<8x128xf32>
      %c0_28 = arith.constant 0 : index
      %c0_29 = arith.constant 0 : index
      %34 = vector.load %arg7[%c0_28, %c0_29] : memref<1x128xf32, #tpu.memory_space<vmem>>, vector<1x128xf32>
      %35 = vector.broadcast %34 : vector<1x128xf32> to vector<8x128xf32>
      %36 = arith.addf %33, %35 : vector<8x128xf32>
      %cst_30 = arith.constant 0.000000e+00 : f32
      %37 = vector.broadcast %cst_30 : f32 to vector<8x128xf32>
      %38 = arith.maximumf %36, %37 : vector<8x128xf32>
      %c0_31 = arith.constant 0 : index
      %c0_32 = arith.constant 0 : index
      %39 = vector.load %arg8[%c0_31, %c0_32] : memref<8x128xf32, #tpu.memory_space<vmem>>, vector<8x128xf32>
      tpu.vector_store %arg8[%c0_31, %c0_32], %38 {strides = array<i32>} : memref<8x128xf32, #tpu.memory_space<vmem>>, vector<8x128xf32>,
    } else {
    }
    return
  }
  func.func @transform_0(%arg0: i32) -> (i32, i32) {
    %c0_i32 = arith.constant 0 : i32
    %0 = arith.minsi %arg0, %c0_i32 : i32
    %c0_i32_0 = arith.constant 0 : i32
    %c0_i32_1 = arith.constant 0 : i32
    return %c0_i32_0, %0 : i32, i32
  }
  func.func @transform_1(%arg0: i32) -> (i32, i32) {
    %c0_i32 = arith.constant 0 : i32
    %0 = arith.minsi %arg0, %c0_i32 : i32
    %c0_i32_0 = arith.constant 0 : i32
    %c0_i32_1 = arith.constant 0 : i32
    return %c0_i32_0, %0 : i32, i32
  }
  func.func @transform_2(%arg0: i32) -> (i32, i32) {
    %c0_i32 = arith.constant 0 : i32
    %0 = arith.minsi %arg0, %c0_i32 : i32
    %c0_i32_0 = arith.constant 0 : i32
    %c0_i32_1 = arith.constant 0 : i32
    return %0, %c0_i32_0 : i32, i32
  }
  func.func @transform_3(%arg0: i32) -> (i32, i32) {
    %c0_i32 = arith.constant 0 : i32
    %0 = arith.minsi %arg0, %c0_i32 : i32
    %c0_i32_0 = arith.constant 0 : i32
    %c0_i32_1 = arith.constant 0 : i32
    return %0, %c0_i32_0 : i32, i32
  }
  func.func @transform_4(%arg0: i32) -> (i32, i32) {
    %c0_i32 = arith.constant 0 : i32
    %c0_i32_0 = arith.constant 0 : i32
    %c0_i32_1 = arith.constant 0 : i32
    return %c0_i32, %c0_i32_0 : i32, i32
  }
  func.func @transform_5(%arg0: i32) -> (i32, i32) {
    %c0_i32 = arith.constant 0 : i32
    %c0_i32_0 = arith.constant 0 : i32
    %c0_i32_1 = arith.constant 0 : i32
    return %c0_i32, %c0_i32_0 : i32, i32
  }
  func.func @transform_6(%arg0: i32) -> (i32, i32) {
    %c0_i32 = arith.constant 0 : i32
    %c0_i32_0 = arith.constant 0 : i32
    %c0_i32_1 = arith.constant 0 : i32
    return %c0_i32, %c0_i32_0 : i32, i32
  }
  func.func @transform_7(%arg0: i32) -> (i32, i32) {
    %c0_i32 = arith.constant 0 : i32
    %c0_i32_0 = arith.constant 0 : i32
    %c0_i32_1 = arith.constant 0 : i32
    return %c0_i32, %c0_i32_0 : i32, i32
  }
}

</mosaic_0001>

<bundles_post_ra>
// kernel: tpu_custom_call.1
= control target key start
LH: loop header
LB: loop body
LE: loop exit
PB: predicated region body
PF: predicated region fallthrough
CT: control target
= control target key end

     0   :  { %v36_v2 = vlaneseq  ;;  %v419_v3 = vmov 0.0|0.0   ;;  %vm420_vm0 = vmmov 0   ;;  %v421_v5 = vmov 0.0   ;;  %s521_s0 = inlined_call_operand.vmem [shape: s32[1,16], index: 0, kind: input, shape index: {}]   ;;  %s522_s1 = inlined_call_operand.vmem [shape: s32[1,24], index: 1, kind: input, shape index: {}]   ;;  %s523_s2 = inlined_call_operand.vmem [shape: f32[16,8], index: 2, kind: input, shape index: {}]   ;;  %s524_s3 = inlined_call_operand.vmem [shape: f32[24,6], index: 3, kind: input, shape index: {}]   ;;  %s525_s4 = inlined_call_operand.vmem [shape: f32[8,4], index: 4, kind: input, shape index: {}]   ;;  %s526_s5 = inlined_call_operand.vmem [shape: f32[18,128], index: 5, kind: input, shape index: {}]   ;;  %s527_s6 = inlined_call_operand.vmem [shape: f32[1,128], index: 6, kind: input, shape index: {}]   ;;  %s528_s7 = inlined_call_operand.hbm [shape: f32[8,128], index: 7, kind: output, shape index: {}]  }
   0x1   :  { %v134_v0 = vld [vmem:[%s524_s3] sm:$0xff]  ;;  %v135_v1 = vld [vmem:[%s524_s3 + $0x8] sm:$0xff]  ;;  %383 = vmatprep.subr.bf16.mxu1 %v419_v3  ;;  %368 = vmatprep.mubr.msk.f32.mxu1 %vm420_vm0, %v421_v5  ;;  %vm33_vm1 = vcmask 48128  }
   0x2   :  { %v384_v4 = vpack.c.bf16 %v135_v1, %v134_v0  ;;  %v338_v6 = vld [vmem:[%s522_s1] ss:$0 sm:$0xff]  ;;  %v47_v8 = vld [vmem:[%s523_s2 + $0x8] sm:$0xff]  ;;  %v37_v9 = vshrl.u32 %v36_v2, 7  ;;  %380 = vmatprep.subr.bf16.mxu0 %v419_v3  ;;  %359 = vmatprep.mubr.msk.f32.mxu0 %vm420_vm0, %v421_v5 }
   0x3   :  { %v46_v7 = vld [vmem:[%s523_s2] sm:$0xff] }
   0x4   :  { %v381_v10 = vpack.c.bf16 %v47_v8, %v46_v7  ;;  %v335_v11 = vld [vmem:[%s521_s0] ss:$0 sm:$0xff] }
   0x5   :  { %12 = vsyncpa [#allocation5], 0  ;;  %385 = vmatpush3.bf16.msra.mxu1 %v384_v4  ;;  %34 = vst.msk [vmem:[#allocation3] sm:$0xff] %vm33_vm1, %v421_v5  ;;  %v136_v12 = vld [vmem:[%s524_s3 + $0x10] sm:$0xff]  ;;  %vm130_vm2 = vcmp.eq.s32.totalorder %v37_v9, %v338_v6  ;;  %vm42_vm3 = vcmp.eq.s32.totalorder %v37_v9, %v335_v11  ;;  %vm48_vm4 = vcmask 130048   ;;  %vm137_vm5 = vcmask 195584  }
   0x6   :  { %366 = vmatprep.subr.mxu1 %v421_v5  ;;  %382 = vmatpush3.bf16.msra.mxu0 %v381_v10  ;;  %v339_v13 = vsel %vm130_vm2, 1.0, %v421_v5  ;;  %v336_v14 = vsel %vm42_vm3, 1.0, %v421_v5  ;;  %vm31_vm6 = vcmask 64512   ;;  %v231_v15 = vld [vmem:[%s526_s5] sm:$0xff]  ;;  %v232_v16 = vld [vmem:[%s526_s5 + $0x8] sm:$0xff]  ;;  %vm245_vm7 = vcmask 1041408  }
   0x7   :  { %386 = vmatprep.subr.bf16.mxu0 %v419_v3  ;;  %32 = vst.msk [vmem:[#allocation2] sm:$0xff] %vm31_vm6, %v421_v5  ;;  %v387_v17 = vpack.c.bf16 %v232_v16, %v231_v15  ;;  %v233_v20 = vld [vmem:[%s526_s5 + $0x10] sm:$0x3]  ;;  %s422_s17 = smov 8   ;;  %v219_v28 = vld [vmem:[%s525_s4] sm:$0xff]  ;;  %s423_s5 = smov 14  }
   0x8   :  { %vm229_vm8 = vcmask 113664   ;;  %vm241_vm9 = vcmask 146432   ;;  %v341_v34 = vld [vmem:[%s527_s6] ss:$0 sm:$0xff]  ;;  %s424_s22 = smov [#allocation4]  }
   0x9   :  { %367 = vmatpush3.msra.mxu1 %v136_v12  ;;  %360 = vmatmul.mubr.msk.f32.vlgmr.msra.gmra.mrb[0].mxu0 %vm48_vm4, %v336_v14  ;;  %s327_s23 = sshll.u32 %s424_s22, 4  ;;  %s328_s23 = int_to_ptr.vmem [resolvable:$true] %s327_s23 }
   0xa   :  { %369 = vmatmul.mubr.msk.f32.vlgmr.msra.gmra.mrb[0].mxu1 %vm137_vm5, %v339_v13  ;;  %377 = vmatprep.mubr.msk.f32.mxu0 %vm420_vm0, %v421_v5  ;;  %s395_s4 = scalar_lea.vmem %s328_s23, 128  ;;  %p400_p1 = scmp.lt.s32.totalorder %s328_s23, %s328_s23 }
   0xb   :  { %388 = vmatpush3.bf16.msra.mxu0 %v387_v17  ;;  %p396_p0 = scmp.ne.s32.totalorder %s328_s23, %s395_s4  ;;  %p401_p2 = scmp.lt.s32.totalorder %s395_s4, %s395_s4 }
   0xc   :  { %375 = vmatprep.subr.mxu0 %v421_v5  ;;  %v133_v19 = vld [vmem:[#allocation3] sm:$0xff] }
   0xd   :  { %p402_p3 = por %p401_p2, %p400_p1 }
   0xe   :  { %v45_v18 = vld [vmem:[#allocation2] sm:$0xff] }
   0xf   :  { %376 = vmatpush3.msk.msra.mxu0 %vm245_vm7, %v233_v20  ;;  %p403_p4 = pnand %p402_p3, %p396_p0 }
  0xdc   :  { %v118_v21 = vpop.f32.mrb[0].mxu0 }
  0xdd   :  { %v207_v22 = vpop.f32.mrb[0].mxu1  ;;  %v122_v23 = vadd.f32 %v118_v21, %v45_v18  ;;  %v361_v24 = vpop.f32.mrb[1].mxu0 }
  0xde   :  { %v211_v25 = vadd.f32 %v207_v22, %v133_v19  ;;  %v370_v26 = vpop.f32.mrb[1].mxu1 }
  0xdf   :  { %124 = vst.msk [vmem:[#allocation2] sm:$0xff] %vm31_vm6, %v122_v23 }
  0xe0   :  { %213 = vst.msk [vmem:[#allocation3] sm:$0xff] %vm33_vm1, %v211_v25 }
  0xe6   :  { %v217_v30 = vld [vmem:[#allocation2] sm:$0xff] }
  0xe7   :  { %v218_v27 = vld [vmem:[#allocation3] sm:$0xff] }
  0xe8   :  { %221 = vrot.lane.b32.xlu0 %v218_v27, %s422_s17 }
  0xec   :  { %225 = vrot.lane.b32.xlu0 %v219_v28, %s423_s5 }
 0x15a   :  { %v222_v29 = vpop.permute.xlu0 %221 }
 0x15b   :  { %v228_v31 = vsel %vm31_vm6, %v217_v30, %v222_v29 }
 0x15e   :  { %v226_v32 = vpop.permute.xlu0 %225 }
 0x15f   :  { %v230_v33 = vsel %vm229_vm8, %v228_v31, %v226_v32 }
 0x160   :  { %378 = vmatmul.mubr.msk.f32.vlgmr.msra.gmra.mrb[2].mxu0 %vm241_vm9, %v230_v33 }
 0x233   :  { %v315_v35 = vpop.f32.mrb[2].mxu0 }
 0x234   :  { %v316_v36 = vadd.f32 %v341_v34, %v315_v35  ;;  %v379_v37 = vpop.f32.mrb[3].mxu0 }
 0x236   :  { %v319_v38 = vmax.f32 %v316_v36, 0.0 }
 0x238   :  { %320 = vst [vmem:[#allocation4] sm:$0xff] %v319_v38 }
 0x239   :  { %406 = shalt.err (!%p403_p4)
}
 0x23a   :  { %s407_s26 = scalar_lea.hbm %s528_s7, 128 }
 0x23b   :  { %p408_p5 = scmp.ne.s32.totalorder %s528_s7, %s407_s26  ;;  %p411_p6 = scmp.lt.u32.totalorder %s407_s26, %s528_s7 }
 0x23d   :  { %p413_p7 = pnand %p411_p6, %p408_p5 }
 0x23f   :  { %416 = shalt.err (!%p413_p7)
}
 0x240   :  { %330 = dma.vmem_to_hbm [thread:$0]  %s328_s23, 128, %s528_s7, [#allocation5]  }
 0x241   :  { %417 = dma.done.wait [#allocation5], 128  }
 0x242   :  { %418 = vsyncadd [#allocation5], 4294967168 }
 0x243   :  { %334 = vsyncpa [#allocation5], 1 }

</bundles_post_ra>
